<compile_context>
chip_gen: v7x
topology: tpu7x:2x2x1
jax: 0.10.0
libtpu: 0.0.40
codegen_flags: <defaults>
</compile_context>

<pallas_src>
import functools
import math

import jax
import jax.numpy as jnp
from jax import lax
from jax.experimental import pallas as pl
from jax.experimental.pallas import tpu as pltpu


# ----------------------------------------------------------------------------
# Shared gate math: per-channel sum -> mean -> k-tap conv (roll+mask on XLU)
# -> sigmoid.  Works on the *folded* lane layout (Cf = fold * C).
# ----------------------------------------------------------------------------
def _conv_sigmoid_gate(acc_sum, w_ref, *, n_total, c_true, fold, k, pad):
    # acc_sum: (1, Cf) f32 per-(folded-lane) sum over all N rows.
    if fold > 1:
        # Folded lane j holds channel j % c_true: fold back to (1, C).
        m = jnp.zeros((1, c_true), jnp.float32)
        for q in range(fold):
            m = m + acc_sum[:, q * c_true:(q + 1) * c_true]
    else:
        m = acc_sum
    m = m * (1.0 / n_total)                                  # (1, C) channel mean

    # Conv1d(1, 1, k, zero padding) along C as k shifted adds:
    #   y[c] += w[j] * m[c + j - pad], zero outside [0, C).
    C = c_true
    col = lax.broadcasted_iota(jnp.int32, (1, C), 1)
    y = jnp.zeros((1, C), jnp.float32)
    for j in range(k):                                       # k is small & static
        s = j - pad
        if s == 0:
            tap = m
        else:
            tap = pltpu.roll(m, shift=(-s) % C, axis=1)      # tap[c] = m[(c+s) % C]
            valid = (col + s >= 0) & (col + s < C)           # mask the wrap-around
            tap = jnp.where(valid, tap, 0.0)
        y = y + w_ref[j] * tap
    g = jax.nn.sigmoid(y)                                    # (1, C) f32 gate
    if fold > 1:
        g = jnp.tile(g, (1, fold))                           # back to folded lanes
    return g                                                 # (1, Cf) f32


# ----------------------------------------------------------------------------
# Fast path: fused mean + conv + sigmoid + multiply, one batch slab per step.
# ----------------------------------------------------------------------------
def _fused_kernel(w_ref, x_ref, o_ref, *, n_total, c_true, fold, k, pad):
    # x_ref / o_ref: (1, Nf, Cf) — the whole per-batch slab.
    xt = x_ref[...]
    acc = jnp.sum(xt.astype(jnp.float32), axis=1)            # (1, Cf)
    g = _conv_sigmoid_gate(acc, w_ref, n_total=n_total, c_true=c_true,
                           fold=fold, k=k, pad=pad)
    o_ref[...] = xt * g[:, None, :].astype(o_ref.dtype)


# ----------------------------------------------------------------------------
# Fallback pass 1: N-tiled mean accumulation (masked partial last tile),
# finalize with conv + sigmoid -> gate (B, 1, Cf).
# ----------------------------------------------------------------------------
def _gate_kernel(w_ref, x_ref, g_ref, acc_ref, *, n_total, nf_rows,
                 c_true, fold, k, pad, needs_mask):
    n = pl.program_id(1)

    @pl.when(n == 0)
    def _():
        acc_ref[...] = jnp.zeros_like(acc_ref)

    xt = x_ref[...].astype(jnp.float32)                      # (1, tn, Cf)
    if needs_mask:
        tn = x_ref.shape[1]
        row = lax.broadcasted_iota(jnp.int32, (1, tn, 1), 1)
        xt = jnp.where(row < nf_rows - n * tn, xt, 0.0)      # drop padded rows
    acc_ref[...] += jnp.sum(xt, axis=1)

    @pl.when(n == pl.num_programs(1) - 1)
    def _():
        g = _conv_sigmoid_gate(acc_ref[...], w_ref, n_total=n_total,
                               c_true=c_true, fold=fold, k=k, pad=pad)
        g_ref[...] = g[:, None, :].astype(g_ref.dtype)


# ----------------------------------------------------------------------------
# Fallback pass 2: out = x * gate (gate broadcast over N), input dtype.
# ----------------------------------------------------------------------------
def _apply_kernel(x_ref, g_ref, o_ref):
    o_ref[...] = x_ref[...] * g_ref[...]


def _vmem_budget():
    try:
        cap = int(getattr(pltpu.get_tpu_info(), "vmem_capacity_bytes",
                          64 * 1024 * 1024))
    except Exception:
        cap = 64 * 1024 * 1024
    # Leave headroom under the physical / scoped limit: ~48 MiB on v7x,
    # ~96 MiB on v5e/v6e.
    return min(int(cap * 0.75), 100 * 1024 * 1024)


def eca_layer_1d_pallas(x, conv_weight, *, block_bytes=8 * 1024 * 1024,
                        force_two_pass=False):
    """x: (B, N, C); conv_weight: (k,) float (PyTorch Conv1d weight (1,1,k) flat)."""
    B, N, C = x.shape
    k = int(conv_weight.shape[0])
    pad = (k - 1) // 2
    itemsize = jnp.dtype(x.dtype).itemsize
    w = conv_weight.astype(jnp.float32)
    vmem_limit = _vmem_budget()

    # Lane-dense folding: fold `fold` rows of N into the lane axis so the last
    # dim is a multiple of 128 (avoids masked vst / <=25%-useful lanes for C<128).
    fold = 1
    if C % 128 != 0:
        g0 = 128 // math.gcd(C, 128)
        if g0 > 1 and N % g0 == 0:
            fold = g0
    Nf, Cf = N // fold, C * fold
    xf = x.reshape(B, Nf, Cf) if fold > 1 else x

    # ---------------- Fused single-pass fast path -----------------------------
    slab = Nf * Cf * itemsize
    fused_need = 4 * slab + Nf * Cf * 4 + (1 << 20)   # dbl-buffered in+out + f32 temp
    if (not force_two_pass) and fused_need <= vmem_limit:
        outf = pl.pallas_call(
            functools.partial(_fused_kernel, n_total=N, c_true=C, fold=fold,
                              k=k, pad=pad),
            out_shape=jax.ShapeDtypeStruct((B, Nf, Cf), x.dtype),
            grid_spec=pltpu.PrefetchScalarGridSpec(
                num_scalar_prefetch=0,
                grid=(B,),
                in_specs=[
                    pl.BlockSpec(memory_space=pltpu.MemorySpace.SMEM),   # weight
                    pl.BlockSpec((1, Nf, Cf), lambda b: (b, 0, 0)),      # x slab
                ],
                out_specs=pl.BlockSpec((1, Nf, Cf), lambda b: (b, 0, 0)),
            ),
            compiler_params=pltpu.CompilerParams(
                dimension_semantics=("parallel",),
                vmem_limit_bytes=vmem_limit),
        )(w, xf)
        return outf.reshape(B, N, C) if fold > 1 else outf

    # ---------------- Two-pass fallback (large N*C) ----------------------------
    # Dtype-aware sublane packing: f32 -> 8, bf16 -> 16, int8/fp8 -> 32 rows.
    pack = max(8, 32 // max(1, itemsize))
    cap_rows = max(1, block_bytes // max(1, Cf * itemsize))
    tn = (cap_rows // pack) * pack if cap_rows >= pack else cap_rows
    tn = max(1, min(Nf, tn))
    nt = pl.cdiv(Nf, tn)
    needs_mask = (Nf % tn) != 0

    # Pass 1: per-channel mean over N (accumulated across the tiled N axis),
    # k-tap conv along C, sigmoid -> gate (B, 1, Cf).
    gate = pl.pallas_call(
        functools.partial(_gate_kernel, n_total=N, nf_rows=Nf, c_true=C,
                          fold=fold, k=k, pad=pad, needs_mask=needs_mask),
        out_shape=jax.ShapeDtypeStruct((B, 1, Cf), x.dtype),
        grid_spec=pltpu.PrefetchScalarGridSpec(
            num_scalar_prefetch=0,
            grid=(B, nt),
            in_specs=[
                pl.BlockSpec(memory_space=pltpu.MemorySpace.SMEM),       # weight
                pl.BlockSpec((1, tn, Cf), lambda b, n: (b, n, 0)),       # x tile
            ],
            out_specs=pl.BlockSpec((1, 1, Cf), lambda b, n: (b, 0, 0)),
            scratch_shapes=[pltpu.VMEM((1, Cf), jnp.float32)],
        ),
        compiler_params=pltpu.CompilerParams(
            dimension_semantics=("parallel", "arbitrary"),
            vmem_limit_bytes=vmem_limit),
    )(w, xf)

    # Pass 2: out = x * gate (gate broadcast over N), memory-bound, input dtype.
    outf = pl.pallas_call(
        _apply_kernel,
        out_shape=jax.ShapeDtypeStruct((B, Nf, Cf), x.dtype),
        grid_spec=pltpu.PrefetchScalarGridSpec(
            num_scalar_prefetch=0,
            grid=(B, nt),
            in_specs=[
                pl.BlockSpec((1, tn, Cf), lambda b, n: (b, n, 0)),       # x tile
                pl.BlockSpec((1, 1, Cf), lambda b, n: (b, 0, 0)),        # gate
            ],
            out_specs=pl.BlockSpec((1, tn, Cf), lambda b, n: (b, n, 0)),
        ),
        compiler_params=pltpu.CompilerParams(
            dimension_semantics=("parallel", "parallel"),
            vmem_limit_bytes=vmem_limit),
    )(xf, gate)

    return outf.reshape(B, N, C) if fold > 1 else outf


def eca_layer_1d_ref(x, w):
    """Pure-JAX reference matching the PyTorch forward."""
    B, N, C = x.shape
    k = w.shape[0]
    pad = (k - 1) // 2
    m = jnp.mean(x.astype(jnp.float32), axis=1)            # (B, C)
    mp = jnp.pad(m, ((0, 0), (pad, pad)))                  # zero padding
    y = jnp.zeros_like(m)
    for j in range(k):
        y = y + w[j] * mp[:, j:j + C]
    y = jax.nn.sigmoid(y)
    return (x.astype(jnp.float32) * y[:, None, :]).astype(x.dtype)


if __name__ == "__main__":
    key = jax.random.PRNGKey(0)
    kx, kw = jax.random.split(key)

    B, N, C = 2, 8, 32       # (batch, seq, channels) per the module's forward
    k_size = 3

    x = jax.random.normal(kx, (B, N, C), dtype=jnp.float32)
    conv_weight = jax.random.normal(kw, (k_size,), dtype=jnp.float32) * 0.5

    # Fused fast path (lane-dense folded layout, C=32 -> fold=4, Cf=128).
    out = jax.block_until_ready(eca_layer_1d_pallas(x, conv_weight))
    ref = eca_layer_1d_ref(x, conv_weight)
    assert out.shape == x.shape and out.dtype == x.dtype
    assert jnp.allclose(out, ref, atol=1e-5, rtol=1e-5), "fused path mismatch"

    # Two-pass fallback path (forced), N not foldable here.
    x2 = jax.random.normal(kx, (2, 10, 32), dtype=jnp.float32)
    out2 = jax.block_until_ready(
        eca_layer_1d_pallas(x2, conv_weight, force_two_pass=True))
    ref2 = eca_layer_1d_ref(x2, conv_weight)
    assert out2.shape == x2.shape and out2.dtype == x2.dtype
    assert jnp.allclose(out2, ref2, atol=1e-5, rtol=1e-5), "two-pass mismatch"

    print("KERNEL_OK")
</pallas_src>

<mosaic_0001>
module attributes {stable_mosaic.version = 11 : i64} {
  func.func @_fused_kernel(%arg0: i32, %arg1: memref<3xf32, #tpu.memory_space<smem>>, %arg2: memref<1x2x128xf32, #tpu.memory_space<vmem>>, %arg3: memref<1x2x128xf32, #tpu.memory_space<vmem>>) attributes {dimension_semantics = [#tpu.dimension_semantics<parallel>], iteration_bounds = array<i64: 2>, scalar_prefetch = 0 : i64, scratch_operands = 0 : i64, tpu.core_type = #tpu.core_type<tc>, window_params = [{transform_indices = @transform_0, window_bounds = array<i64: 3>}, {transform_indices = @transform_1, window_bounds = array<i64: 1, 2, 128>}, {transform_indices = @transform_2, window_bounds = array<i64: 1, 2, 128>}]} {
    %c0 = arith.constant 0 : index
    %c0_0 = arith.constant 0 : index
    %c0_1 = arith.constant 0 : index
    %0 = vector.load %arg2[%c0, %c0_0, %c0_1] : memref<1x2x128xf32, #tpu.memory_space<vmem>>, vector<1x2x128xf32>
    %cst = arith.constant dense<0.000000e+00> : vector<1x128xf32>
    %1 = vector.multi_reduction <add>, %0, %cst [1] : vector<1x2x128xf32> to vector<1x128xf32>
    %cst_2 = arith.constant 0.000000e+00 : f32
    %2 = vector.broadcast %cst_2 : f32 to vector<1x32xf32>
    %3 = vector.extract_strided_slice %1 {offsets = [0, 0], sizes = [1, 32], strides = [1, 1]} : vector<1x128xf32> to vector<1x32xf32>
    %4 = arith.addf %2, %3 : vector<1x32xf32>
    %5 = vector.extract_strided_slice %1 {offsets = [0, 32], sizes = [1, 32], strides = [1, 1]} : vector<1x128xf32> to vector<1x32xf32>
    %6 = arith.addf %4, %5 : vector<1x32xf32>
    %7 = vector.extract_strided_slice %1 {offsets = [0, 64], sizes = [1, 32], strides = [1, 1]} : vector<1x128xf32> to vector<1x32xf32>
    %8 = arith.addf %6, %7 : vector<1x32xf32>
    %9 = vector.extract_strided_slice %1 {offsets = [0, 96], sizes = [1, 32], strides = [1, 1]} : vector<1x128xf32> to vector<1x32xf32>
    %10 = arith.addf %8, %9 : vector<1x32xf32>
    %cst_3 = arith.constant 1.250000e-01 : f32
    %11 = vector.broadcast %cst_3 : f32 to vector<1x32xf32>
    %12 = arith.mulf %10, %11 : vector<1x32xf32>
    %13 = tpu.iota {dimensions = array<i32: 1>} : vector<1x32xi32>
    %cst_4 = arith.constant 0.000000e+00 : f32
    %14 = vector.broadcast %cst_4 : f32 to vector<1x32xf32>
    %c1_i32 = arith.constant 1 : i32
    %15 = tpu.dynamic_rotate %12 by %c1_i32 dim 1 : vector<1x32xf32>, i32 -> vector<1x32xf32>
    %c-1_i32 = arith.constant -1 : i32
    %16 = vector.broadcast %c-1_i32 : i32 to vector<1x32xi32>
    %17 = arith.addi %13, %16 : vector<1x32xi32>
    %c0_i32 = arith.constant 0 : i32
    %18 = vector.broadcast %c0_i32 : i32 to vector<1x32xi32>
    %19 = arith.cmpi sge, %17, %18 : vector<1x32xi32>
    %c-1_i32_5 = arith.constant -1 : i32
    %20 = vector.broadcast %c-1_i32_5 : i32 to vector<1x32xi32>
    %21 = arith.addi %13, %20 : vector<1x32xi32>
    %c32_i32 = arith.constant 32 : i32
    %22 = vector.broadcast %c32_i32 : i32 to vector<1x32xi32>
    %23 = arith.cmpi slt, %21, %22 : vector<1x32xi32>
    %24 = arith.andi %19, %23 : vector<1x32xi1>
    %cst_6 = arith.constant 0.000000e+00 : f32
    %25 = vector.broadcast %cst_6 : f32 to vector<1x32xf32>
    %26 = arith.select %24, %15, %25 : vector<1x32xi1>, vector<1x32xf32>
    %c0_7 = arith.constant 0 : index
    %27 = memref.load %arg1[%c0_7] : memref<3xf32, #tpu.memory_space<smem>>
    %28 = vector.broadcast %27 : f32 to vector<1x32xf32>
    %29 = arith.mulf %28, %26 : vector<1x32xf32>
    %30 = arith.addf %14, %29 : vector<1x32xf32>
    %c1 = arith.constant 1 : index
    %31 = memref.load %arg1[%c1] : memref<3xf32, #tpu.memory_space<smem>>
    %32 = vector.broadcast %31 : f32 to vector<1x32xf32>
    %33 = arith.mulf %32, %12 : vector<1x32xf32>
    %34 = arith.addf %30, %33 : vector<1x32xf32>
    %c31_i32 = arith.constant 31 : i32
    %35 = tpu.dynamic_rotate %12 by %c31_i32 dim 1 : vector<1x32xf32>, i32 -> vector<1x32xf32>
    %c1_i32_8 = arith.constant 1 : i32
    %36 = vector.broadcast %c1_i32_8 : i32 to vector<1x32xi32>
    %37 = arith.addi %13, %36 : vector<1x32xi32>
    %c0_i32_9 = arith.constant 0 : i32
    %38 = vector.broadcast %c0_i32_9 : i32 to vector<1x32xi32>
    %39 = arith.cmpi sge, %37, %38 : vector<1x32xi32>
    %c1_i32_10 = arith.constant 1 : i32
    %40 = vector.broadcast %c1_i32_10 : i32 to vector<1x32xi32>
    %41 = arith.addi %13, %40 : vector<1x32xi32>
    %c32_i32_11 = arith.constant 32 : i32
    %42 = vector.broadcast %c32_i32_11 : i32 to vector<1x32xi32>
    %43 = arith.cmpi slt, %41, %42 : vector<1x32xi32>
    %44 = arith.andi %39, %43 : vector<1x32xi1>
    %cst_12 = arith.constant 0.000000e+00 : f32
    %45 = vector.broadcast %cst_12 : f32 to vector<1x32xf32>
    %46 = arith.select %44, %35, %45 : vector<1x32xi1>, vector<1x32xf32>
    %c2 = arith.constant 2 : index
    %47 = memref.load %arg1[%c2] : memref<3xf32, #tpu.memory_space<smem>>
    %48 = vector.broadcast %47 : f32 to vector<1x32xf32>
    %49 = arith.mulf %48, %46 : vector<1x32xf32>
    %50 = arith.addf %34, %49 : vector<1x32xf32>
    %51 = arith.negf %50 : vector<1x32xf32>
    %52 = math.exp %51 : vector<1x32xf32>
    %cst_13 = arith.constant 1.000000e+00 : f32
    %53 = vector.broadcast %cst_13 : f32 to vector<1x32xf32>
    %54 = arith.addf %53, %52 : vector<1x32xf32>
    %55 = arith.divf %53, %54 : vector<1x32xf32>
    %56 = tpu.concatenate %55, %55, %55, %55 in 1 : vector<1x32xf32>, vector<1x32xf32>, vector<1x32xf32>, vector<1x32xf32> -> vector<1x128xf32>
    %57 = vector.shape_cast %56 : vector<1x128xf32> to vector<1x1x128xf32>
    %58 = vector.broadcast %57 : vector<1x1x128xf32> to vector<1x2x128xf32>
    %59 = arith.mulf %0, %58 : vector<1x2x128xf32>
    %c0_14 = arith.constant 0 : index
    %c0_15 = arith.constant 0 : index
    %c0_16 = arith.constant 0 : index
    %60 = vector.load %arg3[%c0_14, %c0_15, %c0_16] : memref<1x2x128xf32, #tpu.memory_space<vmem>>, vector<1x2x128xf32>
    tpu.vector_store %arg3[%c0_14, %c0_15, %c0_16], %59 {strides = array<i32>} : memref<1x2x128xf32, #tpu.memory_space<vmem>>, vector<1x2x128xf32>,
    return
  }
  func.func @transform_0(%arg0: i32) -> i32 {
    %c0_i32 = arith.constant 0 : i32
    %c0_i32_0 = arith.constant 0 : i32
    return %c0_i32 : i32
  }
  func.func @transform_1(%arg0: i32) -> (i32, i32, i32) {
    %c0_i32 = arith.constant 0 : i32
    %c0_i32_0 = arith.constant 0 : i32
    %c0_i32_1 = arith.constant 0 : i32
    return %arg0, %c0_i32, %c0_i32_0 : i32, i32, i32
  }
  func.func @transform_2(%arg0: i32) -> (i32, i32, i32) {
    %c0_i32 = arith.constant 0 : i32
    %c0_i32_0 = arith.constant 0 : i32
    %c0_i32_1 = arith.constant 0 : i32
    return %arg0, %c0_i32, %c0_i32_0 : i32, i32, i32
  }
}

</mosaic_0001>

<bundles_post_ra>
// kernel: tpu_custom_call.1
= control target key start
LH: loop header
LB: loop body
LE: loop exit
PB: predicated region body
PF: predicated region fallthrough
CT: control target
= control target key end

     0   :  { %7 = vsyncpa [#allocation5], 0  ;;  %s799_s0 = inlined_call_operand.hbm [shape: f32[3], index: 0, kind: input, shape index: {}]   ;;  %s800_s1 = inlined_call_operand.hbm [shape: f32[2,2,128], index: 1, kind: input, shape index: {}]   ;;  %s801_s2 = inlined_call_operand.hbm [shape: f32[2,2,128], index: 2, kind: output, shape index: {}]  }
   0x1   :  { %8 = vsyncpa [#allocation3], 0 }
   0x2   :  { %10 = vsyncpa [#allocation3 + $0x1], 0 }
   0x3   :  { %11 = vsyncpa [#allocation4], 0 }
   0x4   :  { %13 = vsyncpa [#allocation4 + $0x1], 0  ;;  %s578_s9 = smov 0   ;;  %s580_s10 = smov 0  }
   0x5   :  { %s582_s11 = smov 0   ;;  %s584_s12 = smov 0  }
   0x6 LB: > { %s599_s13 = sadd.s32 4294967295, %s553_s12   ;;  %s357_s14 = sadd.s32 4294967294, %s553_s12   ;;  %s553_s12 = sphi %s584_s12, %s822_s12   ;;  %s549_s11 = sphi %s582_s11, %s821_s11   ;;  %s545_s10 = sphi %s580_s10, %s820_s10   ;;  %s541_s9 = sphi %s578_s9, %s819_s9  }
   0x7   : > { %p60_p0 = scmp.ne.s32.totalorder %s545_s10, %s541_s9  ;;  %p802_p1 = scmp.eq.s32.totalorder %s599_s13, 0 }
   0x8   : > { %p90_p3 = scmp.eq.s32.totalorder %s357_s14, 1  ;;  %p358_p5 = scmp.ge.s32.totalorder %s553_s12, 1 }
   0x9   : > { %p608_p4 = por %p802_p1, %p60_p0  ;;  %p97_p7 = scmp.lt.s32.totalorder %s553_s12, 3 }
   0xa   : > { %p613_p6 = por %p90_p3, %p60_p0  ;;  %s624_s18 = sadd.s32 1, %s553_s12  }
   0xb   : > { %s805_s15 = scalar_select %p608_p4, 1, 0 }
   0xc   : > { %s806_s16 = scalar_select %p613_p6, 1, 0 }
   0xd   : > { %p618_p8 = pnand %p358_p5, %p97_p7  ;;  %s44_s19 = ssub.s32 %s553_s12, %s624_s18 }
   0xe   : > { %s47_s20 = sadd.s32 1, %s549_s11  ;;  %p637_p12 = scmp.eq.s32.totalorder %s44_s19, 0 }
   0xf   : > { %p382_p10 = pneg %p618_p8  ;;  %p54_p13 = scmp.ne.s32.totalorder %s549_s11, %s545_s10 }
  0x10   : > { %p55_p0 = scmp.eq.s32.totalorder %s553_s12, 0  ;;  %p395_p3 = scmp.lt.s32.totalorder %s553_s12, 2 }
  0x11   : > { %p633_p11 = pnand %p382_p10, %p802_p1  ;;  %s440_s25 = scalar_lea.hbm %s799_s0, 16 }
  0x12   : > { %p441_p5 = scmp.ne.s32.totalorder %s799_s0, %s440_s25  ;;  %p447_p1 = scmp.lt.u32.totalorder %s440_s25, %s799_s0 }
  0x13   : > { %p442_p7 = pneg %p633_p11 }
  0x15   : > { %p443_p10 = pnand %p442_p7, %p441_p5 }
  0x17   : > { %p444_p9 = pneg %p443_p10 }
  0x19   : > { %p449_p2 = pnand %p447_p1, %p444_p9 }
  0x1b   : > { %452 = shalt.err (!%p449_p2)
}
  0x1c   : > { %s555_s30 = smov [#allocation2]   ;;  %p56_p1 = por %p55_p0, %p54_p13 }
  0x1d   : > { %385 = dma.hbm_to_smem (!%p633_p11), %s799_s0, 16, %s555_s30, [#allocation5]  }
  0x1e   : > { %s664_s5 = scalar_select %p637_p12, %s549_s11, %s47_s20  }
  0x1f   : > { %p810_p2 = scmp.eq.s32.totalorder %s599_s13, 1  ;;  %s119_s7 = sand.u32 1, %s549_s11  }
  0x20   : > { %s362_s8 = sshll.u32 %s553_s12, 5  ;;  %s361_s14 = sshll.u32 %s119_s7, 1 }
  0x21   : > { %p676_p9 = por %p810_p2, %p54_p13  ;;  %s685_s23 = scalar_lea.hbm %s800_s1, %s362_s8 }
  0x22   : > { %s123_s20 = scalar_lea.vmem [#allocation6], %s361_s14  ;;  %p689_p11 = pnand %p395_p3, %p56_p1 }
  0x23   : > { %s811_s6 = scalar_select %p676_p9, 1, 0 }
  0x24   : > { %s130_s22 = sshll.u32 %s123_s20, 4  ;;  %s120_s25 = scalar_lea.sflag [#allocation3], %s119_s7  ;;  %s693_s22 = int_to_ptr.vmem [resolvable:$true] %s130_s22 }
  0x25   : > { %s453_s26 = scalar_lea.hbm %s685_s23, 32  ;;  %p455_p13 = pneg %p689_p11 }
  0x26   : > { %p454_p12 = scmp.ne.s32.totalorder %s685_s23, %s453_s26  ;;  %s458_s29 = scalar_lea.hbm %s800_s1, 64 }
  0x27   : > { %p459_p3 = scmp.lt.u32.totalorder %s685_s23, %s800_s1  ;;  %p460_p7 = scmp.lt.u32.totalorder %s458_s29, %s453_s26 }
  0x28   : > { %p456_p0 = pnand %p455_p13, %p454_p12  ;;  %p462_p1 = scmp.lt.u32.totalorder %s453_s26, %s685_s23 }
  0x29   : > { %p461_p10 = por %p460_p7, %p459_p3 }
  0x2a   : > { %p457_p5 = pneg %p456_p0 }
  0x2b   : > { %p463_p2 = por %p462_p1, %p461_p10 }
  0x2d   : > { %p464_p6 = pnand %p463_p2, %p457_p5 }
  0x2f   : > { %467 = shalt.err (!%p464_p6)
}
  0x30   : > { %s468_s4 = scalar_lea.vmem %s693_s22, 32  ;;  %s556_s7 = smov [#allocation6]  }
  0x31   : > { %p469_p12 = scmp.ne.s32.totalorder %s693_s22, %s468_s4  ;;  %s473_s8 = sshll.u32 %s556_s7, 4  ;;  %s474_s8 = int_to_ptr.vmem [resolvable:$false] %s473_s8 }
  0x32   : > { %s475_s14 = scalar_lea.vmem %s474_s8, 64  ;;  %p476_p4 = scmp.lt.s32.totalorder %s693_s22, %s474_s8 }
  0x33   : > { %p471_p0 = pnand %p469_p12, %p455_p13  ;;  %p477_p3 = scmp.lt.s32.totalorder %s475_s14, %s468_s4 }
  0x35   : > { %p472_p9 = pneg %p471_p0  ;;  %p478_p7 = por %p477_p3, %p476_p4 }
  0x37   : > { %p479_p10 = pnand %p478_p7, %p472_p9 }
  0x39   : > { %482 = shalt.err (!%p479_p10)
}
  0x3a   : > { %389 = dma.hbm_to_vmem [thread:$0]  (!%p689_p11), %s685_s23, 32, %s693_s22, %s120_s25  }
  0x3b   : > { %139 = sbr.rel (%p618_p8) target bundleno = 730 (0x2da), region = 28  ;;  %p813_p6 = scmp.eq.s32.totalorder (!%p618_p8), %s599_s13, 0 }
  0x42   : > { %528 = dma.done.wait (%p813_p6), [#allocation5], 16   ;;  %p814_p13 = pmov %p813_p6 }
  0x43   : > { %s727_s19 = sand.u32 1, %s545_s10   ;;  %p815_p4 = scmp.ne.s32.totalorder %s805_s15, 0 }
  0x44   : > { %530 = vsyncadd (%p814_p13), [#allocation5], 4294967280  ;;  %s365_s21 = sshll.u32 %s727_s19, 1  ;;  %s146_s20 = scalar_lea.sflag [#allocation3], %s727_s19 }
  0x45   : > { %s149_s23 = scalar_lea.vmem [#allocation6], %s365_s21 }
  0x46   : > { %532 = dma.done.wait (%p815_p4), %s146_s20, 32  }
  0x47   : > { %534 = vsyncadd (%p815_p4), %s146_s20, 4294967264 }
  0x48   : > { %154 = sfence }
  0x49   : > { %v737_v0 = vld [vmem:[%s149_s23] sm:$0x3]  ;;  %vm172_vm0 = vcmask 1041408   ;;  %s557_s17 = smov 96   ;;  %s558_s22 = smov 32   ;;  %vm197_vm1 = vcmask 1047808   ;;  %v195_v19 = vlaneseq }
  0x4a   : > { %v173_v1 = vsel %vm172_vm0, %v737_v0, 0.0  ;;  %s559_s15 = smov 64   ;;  %s560_s24 = smov 127   ;;  %vm249_vm6 = vcmask 261120   ;;  %vm251_vm7 = vcmask 523264   ;;  %vm253_vm8 = vcmask 785408  }
  0x4b   : > { %v174_v2 = vrot.slane %v173_v1, 4  ;;  %s561_s25 = smov 97   ;;  %v196_v20 = vand.u32 127, %v195_v19  ;;  %s213_s26 = sld [smem:[#allocation2]]  ;;  %v256_v39 = vshrl.u32 %v195_v19, 7 }
  0x4c   : > { %s367_s27 = sld [smem:[#allocation2 + $0x1]]  ;;  %s368_s28 = sld [smem:[#allocation2 + $0x2]] }
  0x4d   : > { %v175_v3 = vadd.f32 %v174_v2, %v173_v1  ;;  %v204_v21 = vadd.s32 4294967295, %v196_v20  ;;  %v221_v22 = vadd.s32 1, %v196_v20  ;;  %v257_v43 = vsub.s32 0, %v256_v39  ;;  %s371_s29 = sshll.u32 %s599_s13, 5  ;;  %s170_s30 = scalar_lea.vmem [#allocation7], %s365_s21 }
  0x4e   : > { %s275_s3 = sshll.u32 %s170_s30, 4  ;;  %s755_s8 = scalar_lea.hbm %s801_s2, %s371_s29  ;;  %s757_s3 = int_to_ptr.vmem [resolvable:$true] %s275_s3 }
  0x4f   : > { %v176_v4 = vrot.slane %v175_v3, 2  ;;  %vm205_vm2 = vcmp.ge.s32.totalorder %v204_v21, 0  ;;  %vm206_vm3 = vcmp.lt.s32.totalorder %v204_v21, 32  ;;  %vm223_vm4 = vcmp.lt.s32.totalorder %v221_v22, 32  ;;  %s262_s14 = scalar_lea.sflag [#allocation4], %s727_s19  ;;  %s483_s20 = scalar_lea.vmem %s757_s3, 32 }
  0x50   : > { %vm207_vm5 = vmand %vm205_vm2, %vm206_vm3  ;;  %p484_p8 = scmp.ne.s32.totalorder %s757_s3, %s483_s20  ;;  %p816_p9 = scmp.ne.s32.totalorder %s811_s6, 0 }
  0x51   : > { %v177_v5 = vadd.f32 %v176_v4, %v175_v3  ;;  %v214_v23 = vstv %s213_s26  ;;  %s562_s13 = smov [#allocation7]  }
  0x52   : > { %v218_v24 = vstv %s367_s27  ;;  %v230_v27 = vstv %s368_s28  ;;  %p485_p11 = pnand %p484_p8, %p816_p9  ;;  %s487_s21 = sshll.u32 %s562_s13, 4  ;;  %s488_s21 = int_to_ptr.vmem [resolvable:$false] %s487_s21 }
  0x53   : > { %v178_v6 = vrot.slane %v177_v5, 1  ;;  %s489_s23 = scalar_lea.vmem %s488_s21, 64  ;;  %p490_p1 = scmp.lt.s32.totalorder %s757_s3, %s488_s21 }
  0x54   : > { %p486_p5 = pneg %p485_p11  ;;  %p491_p2 = scmp.lt.s32.totalorder %s489_s23, %s483_s20 }
  0x55   : > { %v179_v7 = vadd.f32 %v178_v6, %v177_v5 }
  0x56   : > { %p492_p12 = por %p491_p2, %p490_p1 }
  0x57   : > { %182 = vrot.lane.b32.xlu0 %v179_v7, %s557_s17  ;;  %190 = vrot.lane.b32.xlu1 %v179_v7, %s558_s22 }
  0x58   : > { %p493_p0 = pnand %p492_p12, %p486_p5 }
  0x5b   : > { %186 = vrot.lane.b32.xlu0 %v179_v7, %s559_s15 }
  0xc9   : > { %v183_v8 = vpop.permute.xlu0 %182  ;;  %v191_v11 = vpop.permute.xlu1 %190 }
  0xca   : > { %v185_v9 = vadd.f32 %v183_v8, %v179_v7 }
  0xcd   : > { %v187_v10 = vpop.permute.xlu0 %186 }
  0xce   : > { %v189_v12 = vadd.f32 %v187_v10, %v185_v9 }
  0xd0   : > { %v193_v13 = vadd.f32 %v191_v11, %v189_v12 }
  0xd2   : > { %v194_v14 = vmul.f32 0.125, %v193_v13 }
  0xd4   : > { %198 = vrot.lane.b32.xlu1 %v194_v14, %s558_s22  ;;  %v219_v31 = vmul.f32 %v218_v24, %v194_v14 }
 0x146   : > { %v199_v15 = vpop.permute.xlu1 %198 }
 0x147   : > { %v200_v16 = vsel %vm197_vm1, %v199_v15, %v194_v14 }
 0x148   : > { %201 = vrot.lane.b32.xlu0 %v200_v16, %s558_s22 }
 0x1ba   : > { %v202_v17 = vpop.permute.xlu0 %201 }
 0x1bb   : > { %v203_v18 = vsel %vm197_vm1, %v202_v17, %v194_v14 }
 0x1bc   : > { %225 = vrot.lane.b32.xlu0 %v203_v18, %s560_s24  ;;  %209 = vrot.lane.b32.xlu1 %v203_v18, %s561_s25 }
 0x22e   : > { %v226_v25 = vpop.permute.xlu0 %225  ;;  %v210_v26 = vpop.permute.xlu1 %209 }
 0x22f   : > { %v228_v28 = vsel %vm223_vm4, %v226_v25, 0.0  ;;  %v212_v29 = vsel %vm207_vm5, %v210_v26, 0.0 }
 0x230   : > { %v215_v30 = vmul.f32 %v214_v23, %v212_v29  ;;  %v231_v32 = vmul.f32 %v230_v27, %v228_v28 }
 0x232   : > { %v220_v33 = vadd.f32 %v219_v31, %v215_v30 }
 0x234   : > { %v232_v34 = vadd.f32 %v231_v32, %v220_v33 }
 0x236   : > { %v369_v35 = vmul.f32 -1.442695, %v232_v34 }
 0x238   : > { %436 = vpow2.f32 %v369_v35 }
 0x242   : > { %v437_v36 = vpop.eup %436 }
 0x243   : > { %v236_v37 = vadd.f32 1.0, %v437_v36 }
 0x245   : > { %438 = vrcp.f32 %v236_v37 }
 0x24f   : > { %v439_v38 = vpop.eup %438 }
 0x250   : > { %243 = vrot.lane.b32.xlu0 %v439_v38, %s559_s15  ;;  %240 = vrot.lane.b32.xlu1 %v439_v38, %s558_s22 }
 0x254   : > { %246 = vrot.lane.b32.xlu1 %v439_v38, %s557_s17 }
 0x2c2   : > { %v241_v40 = vpop.permute.xlu1 %240  ;;  %v244_v41 = vpop.permute.xlu0 %243 }
 0x2c3   : > { %v250_v42 = vsel %vm249_vm6, %v439_v38, %v241_v40 }
 0x2c4   : > { %v252_v44 = vsel %vm251_vm7, %v250_v42, %v244_v41 }
 0x2c6   : > { %v247_v45 = vpop.permute.xlu1 %246 }
 0x2c7   : > { %v254_v46 = vsel %vm253_vm8, %v252_v44, %v247_v45 }
 0x2c8   : > { %v258_v47 = vrot.slane %v254_v46, %v257_v43 }
 0x2ca   : > { %v259_v48 = vmul.f32 %v258_v47, %v737_v0 }
 0x2cc   : > { %260 = vst [vmem:[%s170_s30] sm:$0x3] %v259_v48 }
 0x2cd   : > { %496 = shalt.err (!%p493_p0)
}
 0x2ce   : > { %s497_s19 = scalar_lea.hbm %s755_s8, 32  ;;  %s501_s15 = scalar_lea.hbm %s801_s2, 64 }
 0x2cf   : > { %p498_p3 = scmp.ne.s32.totalorder %s755_s8, %s497_s19  ;;  %p502_p6 = scmp.lt.u32.totalorder %s755_s8, %s801_s2 }
 0x2d0   : > { %p503_p13 = scmp.lt.u32.totalorder %s501_s15, %s497_s19  ;;  %p505_p8 = scmp.lt.u32.totalorder %s497_s19, %s755_s8 }
 0x2d1   : > { %p499_p7 = pnand %p498_p3, %p816_p9 }
 0x2d2   : > { %p504_p4 = por %p503_p13, %p502_p6 }
 0x2d3   : > { %p500_p10 = pneg %p499_p7 }
 0x2d4   : > { %p506_p11 = por %p505_p8, %p504_p4 }
 0x2d6   : > { %p507_p5 = pnand %p506_p11, %p500_p10 }
 0x2d8   : > { %510 = shalt.err (!%p507_p5)
}
 0x2d9   : > { %380 = dma.vmem_to_hbm [thread:$0]  (%p816_p9), %s757_s3, 32, %s755_s8, %s262_s14  }
 0x2da PF: > { %s287_s26 = sand.u32 1, %s541_s9   ;;  %p817_p1 = scmp.ne.s32.totalorder %s806_s16, 0 }
 0x2db   : > { %p818_p2 = scmp.ge.s32.totalorder %s553_s12, 2  ;;  %s288_s27 = scalar_lea.sflag [#allocation4], %s287_s26 }
 0x2dd   : > { %p391_p12 = pnand %p818_p2, %p817_p1 }
 0x2df   : > { %536 = dma.done.wait (!%p391_p12), %s288_s27, 32  }
 0x2e0   : > { %538 = vsyncadd (!%p391_p12), %s288_s27, 4294967264  ;;  %p16_p0 = scmp.ge.s32.totalorder %s624_s18, 4   ;;  %s819_s9 = smov %s545_s10 }
 0x2e1   : > { %s820_s10 = smov %s549_s11  ;;  %s821_s11 = smov %s664_s5 }
 0x2e2   : > { %s822_s12 = smov %s624_s18  ;;  %18 = sbr.rel (!%p16_p0) target bundleno = 6 (0x6), region = 78 }
 0x2e9   :  { %293 = vsyncpa [#allocation3], 1 }
 0x2ea   :  { %295 = vsyncpa [#allocation3 + $0x1], 1 }
 0x2eb   :  { %296 = vsyncpa [#allocation4], 1 }
 0x2ec   :  { %298 = vsyncpa [#allocation4 + $0x1], 1 }
 0x2ed   :  { %299 = vsyncpa [#allocation5], 1 }
 0x2ee   :  { %301 = vsyncpa [#allocation5 + $0x1], 1 }

</bundles_post_ra>
